<compile_context>
chip_gen: v6e
topology: v6e:2x2x1
jax: 0.10.0
libtpu: 0.0.40
codegen_flags: <defaults>
</compile_context>

<pallas_src>
import functools
import math

import jax
import jax.numpy as jnp
from jax import lax
from jax.experimental import pallas as pl
from jax.experimental.pallas import tpu as pltpu


def _angular_loss_kernel(x_ref, w_ref, labels_ref, *refs,
                         s, m, eps, loss_type, num_classes, block_c,
                         mask_last_c, return_wf):
    if return_wf:
        wf_ref, L_ref, xn_ref, t_ref, mmax_ref, lsum_ref = refs
    else:
        L_ref, xn_ref, t_ref, mmax_ref, lsum_ref = refs
        wf_ref = None

    c = pl.program_id(1)
    last_c = pl.num_programs(1) - 1

    @pl.when(c == 0)
    def _init():
        # F.normalize(x, p=2, dim=1) == x * rsqrt(max(||x||^2, 1e-24)) (EUP rsqrt).
        x = x_ref[...].astype(jnp.float32)
        ss = jnp.sum(x * x, axis=1, keepdims=True)
        xn_ref[...] = (x * lax.rsqrt(jnp.maximum(ss, 1e-24))).astype(xn_ref.dtype)
        t_ref[...] = jnp.zeros_like(t_ref)
        # Finite sentinel (not -inf) so a fully-masked tile never produces NaN.
        mmax_ref[...] = jnp.full_like(mmax_ref, -1e30)
        lsum_ref[...] = jnp.zeros_like(lsum_ref)

    # Hot path: MXU matmul, contraction on D of both operands -- the (tn, D)
    # weight tile is fed as a transposed RHS, no explicit transpose emitted.
    wf = lax.dot_general(xn_ref[...], w_ref[...],
                         dimension_numbers=(((1,), (1,)), ((), ())),
                         preferred_element_type=jnp.float32)      # (tm, tn) f32
    if return_wf:
        wf_ref[...] = wf.astype(wf_ref.dtype)

    tm, tn = wf.shape
    label_local = labels_ref[...] - c * block_c                   # (tm, 1) int32
    col = lax.broadcasted_iota(jnp.int32, (tm, tn), 1)            # local column ids
    onehot = col == label_local

    # Target cosine wf[i, labels[i]]: exactly one C-tile contributes per row.
    t_ref[...] += jnp.sum(jnp.where(onehot, wf, 0.0), axis=1, keepdims=True)

    # Online, max-subtracted accumulation of sum_{j != y} exp(s * wf[:, j]).
    # The target column (and tail padding on the last partial tile) is masked
    # to -inf here, so no subtraction is needed at finalize time.
    if mask_last_c:
        invalid = onehot | (col >= (num_classes - c * block_c))
    else:
        invalid = onehot
    z = jnp.where(invalid, -jnp.inf, s * wf)
    m_prev = mmax_ref[...]
    m_new = jnp.maximum(m_prev, jnp.max(z, axis=1, keepdims=True))
    lsum_ref[...] = (lsum_ref[...] * jnp.exp(m_prev - m_new)
                     + jnp.sum(jnp.exp(z - m_new), axis=1, keepdims=True))
    mmax_ref[...] = m_new

    @pl.when(c == last_c)
    def _finalize():
        t = t_ref[...]                                            # raw target cosine
        if loss_type == 'cosface':
            numerator = s * (t - m)
        elif loss_type == 'arcface':
            tc = jnp.clip(t, -1.0 + eps, 1.0 - eps)
            # cos(acos(t) + m) == t*cos(m) - sqrt(1 - t^2)*sin(m); exact identity,
            # cos(m)/sin(m) are trace-time constants.
            numerator = s * (tc * math.cos(m) - jnp.sqrt(1.0 - tc * tc) * math.sin(m))
        else:  # sphereface
            # TODO(synk): relies on jnp.arccos lowering inside Mosaic; branch untested.
            tc = jnp.clip(t, -1.0 + eps, 1.0 - eps)
            numerator = s * jnp.cos(m * jnp.arccos(tc))

        m_all = mmax_ref[...]
        # denominator = exp(numerator) + lsum * exp(m_all); stabilised log.
        m2 = jnp.maximum(numerator, m_all)
        log_den = m2 + jnp.log(jnp.exp(numerator - m2)
                               + lsum_ref[...] * jnp.exp(m_all - m2))
        L_ref[...] = numerator - log_den


def angular_penalty_sm_loss(x, weight, labels, *, loss_type='arcface',
                            eps=1e-7, s=None, m=None,
                            block_n=None, block_c=None, return_wf=True):
    """Angular penalty softmax loss (fromset=None path of the PyTorch module).

    x: (N, in_features); weight: (out_features, in_features) as in nn.Linear
    (bias=False); labels: (N,) int.  x / weight may be f32 or bf16.

    Returns (-mean(L), wf) like the PyTorch module when return_wf=True, else
    just -mean(L) (skips the N x C wf HBM writeback).
    """
    loss_type = loss_type.lower()
    assert loss_type in ('arcface', 'sphereface', 'cosface')
    if loss_type == 'arcface':
        s = 64.0 if s is None else s
        m = 0.5 if m is None else m
    elif loss_type == 'sphereface':
        s = 64.0 if s is None else s
        m = 1.35 if m is None else m
    else:  # cosface
        s = 30.0 if s is None else s
        m = 0.4 if m is None else m

    N, D = x.shape
    C, D2 = weight.shape
    assert D == D2

    # MXU operand dtype follows x; mixed-precision weight is cast once here so
    # both the DMA stream and the MXU operands match (halves weight bytes when
    # x is bf16 and the weight was stored in f32).
    mat_dtype = jnp.bfloat16 if x.dtype == jnp.bfloat16 else jnp.float32
    if weight.dtype != mat_dtype:
        weight = weight.astype(mat_dtype)

    # ---- generation-aware tile sizing ------------------------------------
    try:
        vmem_cap = int(pltpu.get_tpu_info().vmem_capacity_bytes)
    except Exception:
        vmem_cap = 64 << 20                      # conservative (v7x)
    big_vmem = vmem_cap >= (96 << 20)            # v5e / v6e (128 MiB)
    if block_n is None:
        block_n = 512 if big_vmem else 256
    if block_c is None:
        block_c = 2048 if big_vmem else 1024

    row_granule = 16 if mat_dtype == jnp.bfloat16 else 8

    if N <= block_n:
        if N >= 2 * row_granule:
            # Keep >= 2 N-tiles so both TensorCores get work (megacore, v7x).
            tm = row_granule * pl.cdiv(pl.cdiv(N, 2), row_granule)
        else:
            tm = N
    else:
        tm = max(row_granule, (min(block_n, N) // row_granule) * row_granule)

    if C <= block_c:
        tn = C
    else:
        tn = max(128, (min(block_c, C) // 128) * 128)

    x_it = jnp.dtype(x.dtype).itemsize
    w_it = jnp.dtype(weight.dtype).itemsize
    out_it = jnp.dtype(x.dtype).itemsize
    mat_it = jnp.dtype(mat_dtype).itemsize

    def _footprint(tm_, tn_):
        dbuf = tm_ * D * x_it + tn_ * D * w_it + tm_ * 4 + tm_ * 4
        if return_wf:
            dbuf += tm_ * tn_ * out_it
        scratch = tm_ * D * mat_it + 3 * tm_ * 4
        return 2 * dbuf + scratch                # double-buffered tiles + scratch

    budget = int(vmem_cap * 0.7)
    while _footprint(tm, tn) > budget and C > tn and tn > 128:
        tn = max(128, tn // 2)
    while _footprint(tm, tn) > budget and N > tm and tm > row_granule:
        tm = max(row_granule, (tm // 2 // row_granule) * row_granule)

    vmem_limit = int(min(vmem_cap - (8 << 20),
                         max(32 << 20, int(_footprint(tm, tn) * 1.5) + (4 << 20))))

    grid = (pl.cdiv(N, tm), pl.cdiv(C, tn))
    mask_last_c = (C % tn) != 0

    labels2d = labels.astype(jnp.int32).reshape(N, 1)

    kernel = functools.partial(
        _angular_loss_kernel, s=float(s), m=float(m), eps=float(eps),
        loss_type=loss_type, num_classes=C, block_c=tn,
        mask_last_c=mask_last_c, return_wf=return_wf)

    out_shapes = []
    out_specs = []
    if return_wf:
        out_shapes.append(jax.ShapeDtypeStruct((N, C), x.dtype))
        out_specs.append(pl.BlockSpec((tm, tn), lambda i, c: (i, c)))
    out_shapes.append(jax.ShapeDtypeStruct((N, 1), jnp.float32))
    out_specs.append(pl.BlockSpec((tm, 1), lambda i, c: (i, 0)))

    bytes_accessed = int(N * D * x_it
                         + grid[0] * C * D * w_it
                         + (N * C * out_it if return_wf else 0)
                         + N * 4 + N * 4)

    outs = pl.pallas_call(
        kernel,
        out_shape=tuple(out_shapes),
        grid_spec=pltpu.PrefetchScalarGridSpec(
            num_scalar_prefetch=0,
            grid=grid,
            in_specs=[pl.BlockSpec((tm, D), lambda i, c: (i, 0)),   # x
                      pl.BlockSpec((tn, D), lambda i, c: (c, 0)),   # weight (C, D)
                      pl.BlockSpec((tm, 1), lambda i, c: (i, 0))],  # labels
            out_specs=out_specs,
            scratch_shapes=[pltpu.VMEM((tm, D), mat_dtype),     # normalized x
                            pltpu.VMEM((tm, 1), jnp.float32),   # target cosine
                            pltpu.VMEM((tm, 1), jnp.float32),   # running max
                            pltpu.VMEM((tm, 1), jnp.float32)]), # running sum
        compiler_params=pltpu.CompilerParams(
            dimension_semantics=("parallel", "arbitrary"),
            vmem_limit_bytes=vmem_limit),
        cost_estimate=pl.CostEstimate(flops=int(2 * N * C * D),
                                      transcendentals=int(N * C),
                                      bytes_accessed=bytes_accessed),
    )(x, weight, labels2d)

    if return_wf:
        wf, L = outs
        return -jnp.mean(L[:, 0]), wf
    (L,) = outs
    return -jnp.mean(L[:, 0])


def _reference(x, weight, labels, *, loss_type, s, m, eps):
    """Pure-JAX reference mirroring the PyTorch math (and the kernel's dtype flow)."""
    mat_dtype = jnp.bfloat16 if x.dtype == jnp.bfloat16 else jnp.float32
    xf = x.astype(jnp.float32)
    xn = xf * lax.rsqrt(jnp.maximum(jnp.sum(xf * xf, axis=1, keepdims=True), 1e-24))
    wf = jnp.dot(xn.astype(mat_dtype), weight.astype(mat_dtype).T,
                 preferred_element_type=jnp.float32,
                 precision=jax.lax.Precision.HIGHEST)
    tgt = jnp.take_along_axis(wf, labels[:, None], axis=1)[:, 0]
    if loss_type == 'cosface':
        num = s * (tgt - m)
    elif loss_type == 'arcface':
        num = s * jnp.cos(jnp.arccos(jnp.clip(tgt, -1.0 + eps, 1.0 - eps)) + m)
    else:
        num = s * jnp.cos(m * jnp.arccos(jnp.clip(tgt, -1.0 + eps, 1.0 - eps)))
    onehot = jax.nn.one_hot(labels, wf.shape[1], dtype=bool)
    sum_excl = jnp.sum(jnp.where(onehot, 0.0, jnp.exp(s * wf)), axis=1)
    L = num - jnp.log(jnp.exp(num) + sum_excl)
    return -jnp.mean(L), wf


def _make_inputs(key, N, D, C, dtype=jnp.float32):
    kx, kw, kl = jax.random.split(key, 3)
    x = jax.random.normal(kx, (N, D), dtype=jnp.float32)
    # nn.Linear(in, out, bias=False) weight: (out, in), uniform(-1/sqrt(in), 1/sqrt(in)).
    bound = 1.0 / (D ** 0.5)
    w = jax.random.uniform(kw, (C, D), minval=-bound, maxval=bound, dtype=jnp.float32)
    labels = jax.random.randint(kl, (N,), 0, C, dtype=jnp.int32)
    return x.astype(dtype), w.astype(dtype), labels


if __name__ == "__main__":
    key = jax.random.PRNGKey(0)

    # 1) Tiny case (single N-tile, single C-tile), arcface, f32 -- tight check.
    x, w, lab = _make_inputs(key, 8, 32, 16)
    loss, wf = angular_penalty_sm_loss(x, w, lab, loss_type='arcface')
    jax.block_until_ready((loss, wf))
    rl, rwf = _reference(x, w, lab, loss_type='arcface', s=64.0, m=0.5, eps=1e-7)
    assert jnp.allclose(wf, rwf, atol=1e-4, rtol=1e-4)
    assert jnp.allclose(loss, rl, atol=2e-3, rtol=1e-3)

    # 2) Tiled case with a ragged class dim (exercises the padding mask):
    #    grid = (2 N-tiles x 2 C-tiles), arcface, f32.
    x, w, lab = _make_inputs(jax.random.PRNGKey(1), 256, 128, 1000)
    loss, wf = angular_penalty_sm_loss(x, w, lab, loss_type='arcface',
                                       block_n=128, block_c=512)
    jax.block_until_ready((loss, wf))
    rl, rwf = _reference(x, w, lab, loss_type='arcface', s=64.0, m=0.5, eps=1e-7)
    assert jnp.allclose(wf, rwf, atol=1e-4, rtol=1e-4)
    assert jnp.allclose(loss, rl, atol=2e-3, rtol=1e-3)

    # 2b) Same inputs, loss-only path (no wf writeback), auto tile sizing.
    loss_only = angular_penalty_sm_loss(x, w, lab, loss_type='arcface',
                                        return_wf=False)
    jax.block_until_ready(loss_only)
    assert jnp.allclose(loss_only, rl, atol=2e-3, rtol=1e-3)

    # 3) bf16 inputs (bf16 MXU path + bf16 wf writeback), cosface, auto tiles.
    xb, wb, lab = _make_inputs(jax.random.PRNGKey(2), 128, 128, 512,
                               dtype=jnp.bfloat16)
    loss_b, wf_b = angular_penalty_sm_loss(xb, wb, lab, loss_type='cosface')
    jax.block_until_ready((loss_b, wf_b))
    rl_b, rwf_b = _reference(xb, wb, lab, loss_type='cosface', s=30.0, m=0.4, eps=1e-7)
    assert wf_b.dtype == jnp.bfloat16
    assert jnp.allclose(wf_b.astype(jnp.float32), rwf_b, atol=2e-2, rtol=2e-2)
    assert jnp.allclose(loss_b, rl_b, atol=5e-2, rtol=5e-2)

    print("KERNEL_OK")
</pallas_src>

<mosaic_0001>
module attributes {stable_mosaic.version = 11 : i64} {
  func.func @_angular_loss_kernel(%arg0: i32, %arg1: i32, %arg2: memref<8x32xf32, #tpu.memory_space<vmem>>, %arg3: memref<16x32xf32, #tpu.memory_space<vmem>>, %arg4: memref<8x1xi32, #tpu.memory_space<vmem>>, %arg5: memref<8x16xf32, #tpu.memory_space<vmem>>, %arg6: memref<8x1xf32, #tpu.memory_space<vmem>>, %arg7: memref<8x32xf32, #tpu.memory_space<vmem>>, %arg8: memref<8x1xf32, #tpu.memory_space<vmem>>, %arg9: memref<8x1xf32, #tpu.memory_space<vmem>>, %arg10: memref<8x1xf32, #tpu.memory_space<vmem>>) attributes {dimension_semantics = [#tpu.dimension_semantics<parallel>, #tpu.dimension_semantics<arbitrary>], iteration_bounds = array<i64: 1, 1>, scalar_prefetch = 0 : i64, scratch_operands = 4 : i64, tpu.core_type = #tpu.core_type<tc>, window_params = [{transform_indices = @transform_0, window_bounds = array<i64: 8, 32>}, {transform_indices = @transform_1, window_bounds = array<i64: 16, 32>}, {transform_indices = @transform_2, window_bounds = array<i64: 8, 1>}, {transform_indices = @transform_3, window_bounds = array<i64: 8, 16>}, {transform_indices = @transform_4, window_bounds = array<i64: 8, 1>}]} {
    %c0_i32 = arith.constant 0 : i32
    %0 = arith.cmpi eq, %arg1, %c0_i32 : i32
    %1 = arith.extui %0 : i1 to i32
    %c0_i32_0 = arith.constant 0 : i32
    %2 = arith.cmpi ne, %1, %c0_i32_0 : i32
    scf.if %2 {
      %c0_28 = arith.constant 0 : index
      %c0_29 = arith.constant 0 : index
      %44 = vector.load %arg2[%c0_28, %c0_29] : memref<8x32xf32, #tpu.memory_space<vmem>>, vector<8x32xf32>
      %45 = arith.mulf %44, %44 : vector<8x32xf32>
      %cst_30 = arith.constant dense<0.000000e+00> : vector<8xf32>
      %46 = vector.multi_reduction <add>, %45, %cst_30 [1] : vector<8x32xf32> to vector<8xf32>
      %47 = vector.shape_cast %46 : vector<8xf32> to vector<8x1xf32>
      %cst_31 = arith.constant 1.000000e-24 : f32
      %48 = vector.broadcast %cst_31 : f32 to vector<8x1xf32>
      %49 = arith.maximumf %47, %48 : vector<8x1xf32>
      %50 = math.rsqrt %49 : vector<8x1xf32>
      %51 = vector.broadcast %50 : vector<8x1xf32> to vector<8x32xf32>
      %52 = arith.mulf %44, %51 : vector<8x32xf32>
      %c0_32 = arith.constant 0 : index
      %c0_33 = arith.constant 0 : index
      %53 = vector.load %arg7[%c0_32, %c0_33] : memref<8x32xf32, #tpu.memory_space<vmem>>, vector<8x32xf32>
      tpu.vector_store %arg7[%c0_32, %c0_33], %52 {strides = array<i32>} : memref<8x32xf32, #tpu.memory_space<vmem>>, vector<8x32xf32>,
      %cst_34 = arith.constant 0.000000e+00 : f32
      %54 = vector.broadcast %cst_34 : f32 to vector<8x1xf32>
      %c0_35 = arith.constant 0 : index
      %c0_36 = arith.constant 0 : index
      %55 = vector.load %arg8[%c0_35, %c0_36] : memref<8x1xf32, #tpu.memory_space<vmem>>, vector<8x1xf32>
      tpu.vector_store %arg8[%c0_35, %c0_36], %54 {strides = array<i32>} : memref<8x1xf32, #tpu.memory_space<vmem>>, vector<8x1xf32>,
      %cst_37 = arith.constant -1.000000e+30 : f32
      %56 = vector.broadcast %cst_37 : f32 to vector<8x1xf32>
      %c0_38 = arith.constant 0 : index
      %c0_39 = arith.constant 0 : index
      %57 = vector.load %arg9[%c0_38, %c0_39] : memref<8x1xf32, #tpu.memory_space<vmem>>, vector<8x1xf32>
      tpu.vector_store %arg9[%c0_38, %c0_39], %56 {strides = array<i32>} : memref<8x1xf32, #tpu.memory_space<vmem>>, vector<8x1xf32>,
      %cst_40 = arith.constant 0.000000e+00 : f32
      %58 = vector.broadcast %cst_40 : f32 to vector<8x1xf32>
      %c0_41 = arith.constant 0 : index
      %c0_42 = arith.constant 0 : index
      %59 = vector.load %arg10[%c0_41, %c0_42] : memref<8x1xf32, #tpu.memory_space<vmem>>, vector<8x1xf32>
      tpu.vector_store %arg10[%c0_41, %c0_42], %58 {strides = array<i32>} : memref<8x1xf32, #tpu.memory_space<vmem>>, vector<8x1xf32>,
    } else {
    }
    %c0 = arith.constant 0 : index
    %c0_1 = arith.constant 0 : index
    %3 = vector.load %arg7[%c0, %c0_1] : memref<8x32xf32, #tpu.memory_space<vmem>>, vector<8x32xf32>
    %c0_2 = arith.constant 0 : index
    %c0_3 = arith.constant 0 : index
    %4 = vector.load %arg3[%c0_2, %c0_3] : memref<16x32xf32, #tpu.memory_space<vmem>>, vector<16x32xf32>
    %cst = arith.constant dense<0.000000e+00> : vector<8x16xf32>
    %5 = tpu.matmul %3, %4, %cst {dimension_numbers = #tpu.dot_dimension_numbers<[1], [1], [0], [0], [0, 0, 1, 0], [], []>} : vector<8x32xf32>, vector<16x32xf32>, vector<8x16xf32> -> vector<8x16xf32>
    %c0_4 = arith.constant 0 : index
    %c0_5 = arith.constant 0 : index
    %6 = vector.load %arg5[%c0_4, %c0_5] : memref<8x16xf32, #tpu.memory_space<vmem>>, vector<8x16xf32>
    tpu.vector_store %arg5[%c0_4, %c0_5], %5 {strides = array<i32>} : memref<8x16xf32, #tpu.memory_space<vmem>>, vector<8x16xf32>,
    %c0_6 = arith.constant 0 : index
    %c0_7 = arith.constant 0 : index
    %7 = vector.load %arg4[%c0_6, %c0_7] : memref<8x1xi32, #tpu.memory_space<vmem>>, vector<8x1xi32>
    %c16_i32 = arith.constant 16 : i32
    %8 = arith.muli %arg1, %c16_i32 : i32
    %9 = vector.broadcast %8 : i32 to vector<8x1xi32>
    %10 = arith.subi %7, %9 : vector<8x1xi32>
    %11 = tpu.iota {dimensions = array<i32: 1>} : vector<8x16xi32>
    %12 = vector.broadcast %10 : vector<8x1xi32> to vector<8x16xi32>
    %13 = arith.cmpi eq, %11, %12 : vector<8x16xi32>
    %c0_8 = arith.constant 0 : index
    %c0_9 = arith.constant 0 : index
    %14 = vector.load %arg8[%c0_8, %c0_9] : memref<8x1xf32, #tpu.memory_space<vmem>>, vector<8x1xf32>
    %cst_10 = arith.constant 0.000000e+00 : f32
    %15 = vector.broadcast %cst_10 : f32 to vector<8x16xf32>
    %16 = arith.select %13, %5, %15 : vector<8x16xi1>, vector<8x16xf32>
    %cst_11 = arith.constant dense<0.000000e+00> : vector<8xf32>
    %17 = vector.multi_reduction <add>, %16, %cst_11 [1] : vector<8x16xf32> to vector<8xf32>
    %18 = vector.shape_cast %17 : vector<8xf32> to vector<8x1xf32>
    %19 = arith.addf %14, %18 : vector<8x1xf32>
    %c0_12 = arith.constant 0 : index
    %c0_13 = arith.constant 0 : index
    %20 = vector.load %arg8[%c0_12, %c0_13] : memref<8x1xf32, #tpu.memory_space<vmem>>, vector<8x1xf32>
    tpu.vector_store %arg8[%c0_12, %c0_13], %19 {strides = array<i32>} : memref<8x1xf32, #tpu.memory_space<vmem>>, vector<8x1xf32>,
    %cst_14 = arith.constant 6.400000e+01 : f32
    %21 = vector.broadcast %cst_14 : f32 to vector<8x16xf32>
    %22 = arith.mulf %21, %5 : vector<8x16xf32>
    %cst_15 = arith.constant 0xFF800000 : f32
    %23 = vector.broadcast %cst_15 : f32 to vector<8x16xf32>
    %24 = arith.select %13, %23, %22 : vector<8x16xi1>, vector<8x16xf32>
    %c0_16 = arith.constant 0 : index
    %c0_17 = arith.constant 0 : index
    %25 = vector.load %arg9[%c0_16, %c0_17] : memref<8x1xf32, #tpu.memory_space<vmem>>, vector<8x1xf32>
    %cst_18 = arith.constant dense<0xFF800000> : vector<8xf32>
    %26 = vector.multi_reduction <maximumf>, %24, %cst_18 [1] : vector<8x16xf32> to vector<8xf32>
    %27 = vector.shape_cast %26 : vector<8xf32> to vector<8x1xf32>
    %28 = arith.maximumf %25, %27 : vector<8x1xf32>
    %c0_19 = arith.constant 0 : index
    %c0_20 = arith.constant 0 : index
    %29 = vector.load %arg10[%c0_19, %c0_20] : memref<8x1xf32, #tpu.memory_space<vmem>>, vector<8x1xf32>
    %30 = arith.subf %25, %28 : vector<8x1xf32>
    %31 = math.exp %30 : vector<8x1xf32>
    %32 = arith.mulf %29, %31 : vector<8x1xf32>
    %33 = vector.broadcast %28 : vector<8x1xf32> to vector<8x16xf32>
    %34 = arith.subf %24, %33 : vector<8x16xf32>
    %35 = math.exp %34 : vector<8x16xf32>
    %cst_21 = arith.constant dense<0.000000e+00> : vector<8xf32>
    %36 = vector.multi_reduction <add>, %35, %cst_21 [1] : vector<8x16xf32> to vector<8xf32>
    %37 = vector.shape_cast %36 : vector<8xf32> to vector<8x1xf32>
    %38 = arith.addf %32, %37 : vector<8x1xf32>
    %c0_22 = arith.constant 0 : index
    %c0_23 = arith.constant 0 : index
    %39 = vector.load %arg10[%c0_22, %c0_23] : memref<8x1xf32, #tpu.memory_space<vmem>>, vector<8x1xf32>
    tpu.vector_store %arg10[%c0_22, %c0_23], %38 {strides = array<i32>} : memref<8x1xf32, #tpu.memory_space<vmem>>, vector<8x1xf32>,
    %c0_24 = arith.constant 0 : index
    %c0_25 = arith.constant 0 : index
    %40 = vector.load %arg9[%c0_24, %c0_25] : memref<8x1xf32, #tpu.memory_space<vmem>>, vector<8x1xf32>
    tpu.vector_store %arg9[%c0_24, %c0_25], %28 {strides = array<i32>} : memref<8x1xf32, #tpu.memory_space<vmem>>, vector<8x1xf32>,
    %c0_i32_26 = arith.constant 0 : i32
    %41 = arith.cmpi eq, %arg1, %c0_i32_26 : i32
    %42 = arith.extui %41 : i1 to i32
    %c0_i32_27 = arith.constant 0 : i32
    %43 = arith.cmpi ne, %42, %c0_i32_27 : i32
    scf.if %43 {
      %c0_28 = arith.constant 0 : index
      %c0_29 = arith.constant 0 : index
      %44 = vector.load %arg8[%c0_28, %c0_29] : memref<8x1xf32, #tpu.memory_space<vmem>>, vector<8x1xf32>
      %cst_30 = arith.constant -0.99999988 : f32
      %cst_31 = arith.constant 0.99999988 : f32
      %45 = vector.broadcast %cst_30 : f32 to vector<8x1xf32>
      %46 = arith.maximumf %45, %44 : vector<8x1xf32>
      %47 = vector.broadcast %cst_31 : f32 to vector<8x1xf32>
      %48 = arith.minimumf %47, %46 : vector<8x1xf32>
      %cst_32 = arith.constant 0.87758255 : f32
      %49 = vector.broadcast %cst_32 : f32 to vector<8x1xf32>
      %50 = arith.mulf %48, %49 : vector<8x1xf32>
      %51 = arith.mulf %48, %48 : vector<8x1xf32>
      %cst_33 = arith.constant 1.000000e+00 : f32
      %52 = vector.broadcast %cst_33 : f32 to vector<8x1xf32>
      %53 = arith.subf %52, %51 : vector<8x1xf32>
      %54 = math.sqrt %53 : vector<8x1xf32>
      %cst_34 = arith.constant 0.47942555 : f32
      %55 = vector.broadcast %cst_34 : f32 to vector<8x1xf32>
      %56 = arith.mulf %54, %55 : vector<8x1xf32>
      %57 = arith.subf %50, %56 : vector<8x1xf32>
      %cst_35 = arith.constant 6.400000e+01 : f32
      %58 = vector.broadcast %cst_35 : f32 to vector<8x1xf32>
      %59 = arith.mulf %58, %57 : vector<8x1xf32>
      %c0_36 = arith.constant 0 : index
      %c0_37 = arith.constant 0 : index
      %60 = vector.load %arg9[%c0_36, %c0_37] : memref<8x1xf32, #tpu.memory_space<vmem>>, vector<8x1xf32>
      %61 = arith.maximumf %59, %60 : vector<8x1xf32>
      %62 = arith.subf %59, %61 : vector<8x1xf32>
      %63 = math.exp %62 : vector<8x1xf32>
      %c0_38 = arith.constant 0 : index
      %c0_39 = arith.constant 0 : index
      %64 = vector.load %arg10[%c0_38, %c0_39] : memref<8x1xf32, #tpu.memory_space<vmem>>, vector<8x1xf32>
      %65 = arith.subf %60, %61 : vector<8x1xf32>
      %66 = math.exp %65 : vector<8x1xf32>
      %67 = arith.mulf %64, %66 : vector<8x1xf32>
      %68 = arith.addf %63, %67 : vector<8x1xf32>
      %69 = math.log %68 : vector<8x1xf32>
      %70 = arith.addf %61, %69 : vector<8x1xf32>
      %71 = arith.subf %59, %70 : vector<8x1xf32>
      %c0_40 = arith.constant 0 : index
      %c0_41 = arith.constant 0 : index
      %72 = vector.load %arg6[%c0_40, %c0_41] : memref<8x1xf32, #tpu.memory_space<vmem>>, vector<8x1xf32>
      tpu.vector_store %arg6[%c0_40, %c0_41], %71 {strides = array<i32>} : memref<8x1xf32, #tpu.memory_space<vmem>>, vector<8x1xf32>,
    } else {
    }
    return
  }
  func.func @transform_0(%arg0: i32, %arg1: i32) -> (i32, i32) {
    %c0_i32 = arith.constant 0 : i32
    %c0_i32_0 = arith.constant 0 : i32
    return %arg0, %c0_i32 : i32, i32
  }
  func.func @transform_1(%arg0: i32, %arg1: i32) -> (i32, i32) {
    %c0_i32 = arith.constant 0 : i32
    %c0_i32_0 = arith.constant 0 : i32
    return %arg1, %c0_i32 : i32, i32
  }
  func.func @transform_2(%arg0: i32, %arg1: i32) -> (i32, i32) {
    %c0_i32 = arith.constant 0 : i32
    %c0_i32_0 = arith.constant 0 : i32
    return %arg0, %c0_i32 : i32, i32
  }
  func.func @transform_3(%arg0: i32, %arg1: i32) -> (i32, i32) {
    %c0_i32 = arith.constant 0 : i32
    return %arg0, %arg1 : i32, i32
  }
  func.func @transform_4(%arg0: i32, %arg1: i32) -> (i32, i32) {
    %c0_i32 = arith.constant 0 : i32
    %c0_i32_0 = arith.constant 0 : i32
    return %arg0, %c0_i32 : i32, i32
  }
}

</mosaic_0001>

<bundles_post_ra>
// kernel: tpu_custom_call.1
= control target key start
LH: loop header
LB: loop body
LE: loop exit
PB: predicated region body
PF: predicated region fallthrough
CT: control target
= control target key end

     0   :  { %10 = vsyncpa [#allocation7], 0  ;;  %s378_s0 = inlined_call_operand.vmem [shape: f32[8,32], index: 0, kind: input, shape index: {}]   ;;  %s379_s1 = inlined_call_operand.hbm [shape: f32[16,32], index: 1, kind: input, shape index: {}]   ;;  %s380_s2 = inlined_call_operand.vmem [shape: s32[8,1], index: 2, kind: input, shape index: {}]   ;;  %s381_s3 = inlined_call_operand.hbm [shape: f32[8,16], index: 3, kind: output, shape index: {0}]   ;;  %s382_s4 = inlined_call_operand.vmem [shape: f32[8,1], index: 4, kind: output, shape index: {1}]  }
   0x1   :  { %11 = vsyncpa [#allocation8], 0  ;;  %s314_s15 = smov [#allocation6]  }
   0x2   :  { %s19_s16 = sshll.u32 %s314_s15, 4  ;;  %s20_s16 = int_to_ptr.vmem [resolvable:$true] %s19_s16 }
   0x3   :  { %s278_s17 = scalar_lea.vmem %s20_s16, 256  ;;  %p283_p1 = scmp.lt.s32.totalorder %s20_s16, %s20_s16 }
   0x4   :  { %p279_p0 = scmp.ne.s32.totalorder %s20_s16, %s278_s17  ;;  %p284_p2 = scmp.lt.s32.totalorder %s278_s17, %s278_s17 }
   0x6   :  { %p285_p3 = por %p284_p2, %p283_p1 }
   0x8   :  { %p286_p4 = pnand %p285_p3, %p279_p0 }
   0xa   :  { %289 = shalt.err (!%p286_p4)
}
   0xb   :  { %s315_s18 = smov 128   ;;  %s316_s19 = smov 8  }
   0xc   :  { %25 = dma.hbm_to_vmem [thread:$0]  %s379_s1, 256, %s20_s16, [#allocation7], %s315_s18, %s315_s18, %s316_s19  }
   0xd   :  { %310 = dma.done.wait [#allocation7], 256  }
   0xe   :  { %311 = vsyncadd [#allocation7], 4294967040  ;;  %v35_v0 = vld [vmem:[%s378_s0] sm:$0xff]  ;;  %vm37_vm0 = vcmask 261120   ;;  %vm45_vm1 = vcmask 7168   ;;  %v317_v3 = vmov 0.0   ;;  %v138_v14 = vlaneseq }
   0xf   :  { %v36_v1 = vmul.f32 %v35_v0, %v35_v0  ;;  %239 = vmatprep.subr.mxu0 %v317_v3  ;;  %v51_v4 = vld [vmem:[#allocation6 + $0x8] sm:$0xff]  ;;  %46 = vst.msk [vmem:[#allocation3] sm:$0xff] %vm45_vm1, %v317_v3  ;;  %48 = vst.msk [vmem:[#allocation5] sm:$0xff] %vm45_vm1, %v317_v3  ;;  %vm318_vm2 = vmmov 0   ;;  %v50_v5 = vld [vmem:[#allocation6] sm:$0xff]  ;;  %v319_v7 = vmov 0  }
  0x10   :  { %240 = vmatpush3.xpose.msk.msra.mxu0 %vm37_vm0, %v51_v4  ;;  %243 = vmatprep.mubr.msk.f32.mxu0 %vm318_vm2, %v317_v3  ;;  %v134_v6 = vld [vmem:[%s380_s2] sm:$0xff]  ;;  %v320_v13 = vmov -1e+30   ;;  %v139_v15 = vand.u32 127, %v138_v14  ;;  %vm132_vm4 = vcmask 130048   ;;  %s321_s2 = smov [#allocation9]  }
  0x11   :  { %v38_v2 = vsel %vm37_vm0, %v36_v1, 0.0  ;;  %241 = vmatprep.subr.mxu0 %v317_v3  ;;  %254 = vset.pattern.permute.xlu0 %v319_v7  ;;  %47 = vst.msk [vmem:[#allocation4] sm:$0xff] %vm45_vm1, %v320_v13  ;;  %s219_s24 = sshll.u32 %s321_s2, 4  ;;  %s220_s24 = int_to_ptr.vmem [resolvable:$true] %s219_s24 }
  0x12   :  { %39 = vadd.xlane.f32.xlu0 %v38_v2  ;;  %255 = vset.pattern.permute.xlu1 %v319_v7  ;;  %s290_s25 = scalar_lea.vmem %s220_s24, 128  ;;  %p295_p6 = scmp.lt.s32.totalorder %s220_s24, %s220_s24 }
  0x13   :  { %p291_p5 = scmp.ne.s32.totalorder %s220_s24, %s290_s25  ;;  %p296_p7 = scmp.lt.s32.totalorder %s290_s25, %s290_s25 }
  0x14   :  { %242 = vmatpush3.xpose.msk.msra.mxu0 %vm37_vm0, %v50_v5 }
  0x15   :  { %p297_p8 = por %p296_p7, %p295_p6 }
  0x16   :  { %v144_v33 = vld [vmem:[#allocation3] sm:$0xff] }
  0x17   :  { %p298_p9 = pnand %p297_p8, %p291_p5 }
  0x18   :  { %v154_v23 = vld [vmem:[#allocation4] sm:$0xff] }
  0x28   :  { %141 = vperm.xlu0 %254, %v134_v6  }
  0x9b   :  { %v40_v8 = vpop.xlane.xlu0 %39 }
  0x9c   :  { %v41_v9 = vmax.f32 %v40_v8, 1e-24 }
  0x9e   :  { %256 = vrsqrt.f32 %v41_v9 }
  0xa3   :  { %v142_v16 = vpop.permute.xlu0 %141 }
  0xa4   :  { %vm143_vm3 = vcmp.eq.s32.totalorder %v139_v15, %v142_v16 }
  0xab   :  { %v257_v10 = vpop.eup %256 }
  0xac   :  { %v43_v11 = vmul.f32 %v257_v10, %v35_v0 }
  0xae   :  { %44 = vst.msk [vmem:[#allocation2] sm:$0xff] %vm37_vm0, %v43_v11 }
  0xb5   :  { %v49_v12 = vld [vmem:[#allocation2] sm:$0xff] }
  0xb6   :  { %244 = vmatmul.mubr.msk.f32.vlgmr.msra.gmra.mxu0 %vm37_vm0, %v49_v12 }
 0x176   :  { %v128_v17 = vpop.f32.mrf.mxu0 }
 0x177   :  { %v152_v18 = vmul.f32 64.0, %v128_v17  ;;  %133 = vst.msk [vmem:[#allocation9] sm:$0xff] %vm132_vm4, %v128_v17  ;;  %v145_v19 = vsel %vm143_vm3, %v128_v17, 0.0 }
 0x178   :  { %v245_v20 = vpop.f32.mrf.mxu0  ;;  %v146_v27 = vsel %vm132_vm4, %v145_v19, 0.0 }
 0x179   :  { %v153_v21 = vsel %vm143_vm3, -inf, %v152_v18 }
 0x17a   :  { %v155_v22 = vsel %vm132_vm4, %v153_v21, -inf }
 0x17b   :  { %156 = vmax.xlane.f32.xlu1 %v155_v22 }
 0x204   :  { %v157_v24 = vpop.xlane.xlu1 %156 }
 0x205   :  { %v158_v25 = vmax.f32 %v154_v23, %v157_v24 }
 0x207   :  { %v160_v26 = vsub.f32 %v154_v23, %v158_v25  ;;  %177 = vst.msk [vmem:[#allocation4] sm:$0xff] %vm45_vm1, %v158_v25  ;;  %166 = vperm.xlu1 %255, %v158_v25  }
 0x22b   :  { %147 = vadd.xlane.f32.xlu1 %v146_v27 }
 0x282   :  { %v167_v28 = vpop.permute.xlu1 %166 }
 0x283   :  { %v169_v29 = vsub.f32 %v153_v21, %v167_v28 }
 0x285   :  { %v170_v30 = vmul.f32 1.442695, %v169_v29 }
 0x287   :  { %258 = vpow2.f32 %v170_v30 }
 0x294   :  { %v259_v31 = vpop.eup %258 }
 0x295   :  { %v172_v32 = vsel %vm132_vm4, %v259_v31, 0.0 }
 0x296   :  { %173 = vadd.xlane.f32.xlu0 %v172_v32 }
 0x2b4   :  { %v148_v34 = vpop.xlane.xlu1 %147 }
 0x2b5   :  { %v149_v35 = vadd.f32 %v148_v34, %v144_v33 }
 0x2b7   :  { %151 = vst.msk [vmem:[#allocation3] sm:$0xff] %vm45_vm1, %v149_v35 }
 0x2b8   :  { %301 = shalt.err (!%p298_p9)
}
 0x2b9   :  { %222 = dma.vmem_to_hbm [thread:$0]  %s220_s24, 128, %s381_s3, [#allocation8]   ;;  %v161_v48 = vmul.f32 1.442695, %v160_v26  ;;  %v197_v50 = vld [vmem:[#allocation4] sm:$0xff]  ;;  %v159_v57 = vld [vmem:[#allocation5] sm:$0xff] }
 0x2be   :  { %v181_v36 = vld [vmem:[#allocation3] sm:$0xff] }
 0x2bf   :  { %v235_v37 = vclamps-f32 %v181_v36, 0.9999999 }
 0x2c1   :  { %v185_v38 = vmul.f32 %v235_v37, %v235_v37  ;;  %v184_v46 = vmul.f32 0.87758255, %v235_v37 }
 0x2c3   :  { %v186_v39 = vsub.f32 1.0, %v185_v38 }
 0x2c5   :  { %260 = vrsqrt.f32 %v186_v39  ;;  %vm189_vm5 = vcmp.eq.f32.partialorder %v186_v39, inf  ;;  %v192_v43 = vand.u32 2147483648, %v186_v39  ;;  %vm191_vm6 = vcmp.eq.f32.partialorder %v186_v39, 0.0 }
 0x2c6   :  { %262 = vpow2.f32 %v161_v48 }
 0x2d2   :  { %v261_v40 = vpop.eup %260 }
 0x2d3   :  { %v188_v41 = vmul.f32 %v261_v40, %v186_v39  ;;  %v263_v56 = vpop.eup %262 }
 0x2d4   :  { %v163_v58 = vmul.f32 %v263_v56, %v159_v57 }
 0x2d5   :  { %v190_v42 = vsel %vm189_vm5, %v186_v39, %v188_v41 }
 0x2d6   :  { %v193_v44 = vsel %vm191_vm6, %v192_v43, %v190_v42 }
 0x2d7   :  { %v194_v45 = vmul.f32 0.47942555, %v193_v44 }
 0x2d9   :  { %v195_v47 = vsub.f32 %v184_v46, %v194_v45 }
 0x2db   :  { %v196_v49 = vmul.f32 64.0, %v195_v47 }
 0x2dd   :  { %v198_v51 = vmax.f32 %v196_v49, %v197_v50 }
 0x2df   :  { %v203_v52 = vsub.f32 %v197_v50, %v198_v51  ;;  %v199_v53 = vsub.f32 %v196_v49, %v198_v51 }
 0x2e1   :  { %v204_v54 = vmul.f32 1.442695, %v203_v52  ;;  %v200_v55 = vmul.f32 1.442695, %v199_v53 }
 0x2e3   :  { %264 = vpow2.f32 %v204_v54 }
 0x2e4   :  { %266 = vpow2.f32 %v200_v55 }
 0x2f0   :  { %v265_v61 = vpop.eup %264 }
 0x2f1   :  { %v267_v0 = vpop.eup %266 }
 0x31f   :  { %v174_v59 = vpop.xlane.xlu0 %173 }
 0x320   :  { %v175_v60 = vadd.f32 %v174_v59, %v163_v58 }
 0x322   :  { %176 = vst.msk [vmem:[#allocation5] sm:$0xff] %vm45_vm1, %v175_v60 }
 0x329   :  { %v202_v62 = vld [vmem:[#allocation5] sm:$0xff] }
 0x32a   :  { %v206_v63 = vmul.f32 %v265_v61, %v202_v62 }
 0x32c   :  { %v207_v1 = vadd.f32 %v267_v0, %v206_v63 }
 0x32e   :  { %268 = vlog2.f32 %v207_v1 }
 0x33b   :  { %v269_v2 = vpop.eup %268 }
 0x33c   :  { %v209_v3 = vmul.f32 0.6931472, %v269_v2 }
 0x33e   :  { %v210_v4 = vadd.f32 %v209_v3, %v198_v51 }
 0x340   :  { %v211_v5 = vsub.f32 %v196_v49, %v210_v4 }
 0x342   :  { %212 = vst.msk [vmem:[%s382_s4] sm:$0xff] %vm45_vm1, %v211_v5 }
 0x343   :  { %312 = dma.done.wait [#allocation8], 128  }
 0x344   :  { %313 = vsyncadd [#allocation8], 4294967168 }
 0x345   :  { %230 = vsyncpa [#allocation7], 1 }
 0x346   :  { %231 = vsyncpa [#allocation8], 1 }

</bundles_post_ra>
